<compile_context>
chip_gen: v6e
topology: v6e:2x2x1
jax: 0.10.0
libtpu: 0.0.40
codegen_flags: <defaults>
</compile_context>

<pallas_src>
import functools

import jax
import jax.numpy as jnp
from jax.experimental import pallas as pl
from jax.experimental.pallas import tpu as pltpu


def _round_up(x, m):
    return ((x + m - 1) // m) * m


def _learnable_sigmoid_kernel(x_ref, slope_ref, o_ref, *, half_beta):
    # x_ref/o_ref: (tB, tF, tT)   slope_ref: (tF, 1)
    x = x_ref[...].astype(jnp.float32)
    s = slope_ref[...].astype(jnp.float32)          # (tF, 1)
    z = s[None, :, :] * x                           # broadcast over batch & lanes
    # beta * sigmoid(z) == half_beta * tanh(z / 2) + half_beta  (single EUP op)
    # TODO(synk): on v6e/v7x a bf16 compute path (skip the f32 upcast) would
    # halve VALU/EUP pressure for bf16 I/O; kept f32 here for accuracy parity.
    o_ref[...] = (half_beta * jnp.tanh(0.5 * z) + half_beta).astype(o_ref.dtype)


def learnable_sigmoid_2d(x, slope, beta=1.0):
    """x: (..., F, T), slope: (F, 1). Returns beta * sigmoid(slope * x) in x.dtype."""
    orig_shape = x.shape
    F = slope.shape[0]
    if slope.shape != (F, 1):
        raise ValueError(f"slope must have shape (F, 1), got {slope.shape}")
    if x.ndim < 2 or x.shape[-2] != F:
        raise ValueError(f"x second-to-last dim must be {F}, got shape {x.shape}")

    T = x.shape[-1]
    B = 1
    for d in x.shape[:-2]:
        B *= d
    x3 = x.reshape(B, F, T)                         # contiguous -> free reshape

    itemsize = jnp.dtype(x.dtype).itemsize
    sub = max(8, 32 // itemsize)                    # packed sublane granularity

    # ~4 MiB per live tile; x + out are each double-buffered -> <= ~16 MiB,
    # comfortably inside the scoped-VMEM default on v5e/v6e/v7x.
    tile_budget = 4 << 20

    # Lane tile: 128-multiple in the 512-2048 sweet spot; cdiv grid masks the
    # ragged last block, so no divisibility requirement.
    tT = min(2048, _round_up(T, 128))

    if F * tT * itemsize <= tile_budget:
        # Small/medium F: keep the full F per block and span batches for fat tiles.
        tF = F
        tB = max(1, min(B, tile_budget // (F * tT * itemsize)))
    else:
        # Large F: one batch per block, split F on sublane-packed granularity.
        tB = 1
        tF = max(sub, (tile_budget // (tT * itemsize)) // sub * sub)
        tF = min(tF, F) if F % sub == 0 or tF < F else F
        if tF >= F:
            tF = F

    grid = (pl.cdiv(B, tB), pl.cdiv(F, tF), pl.cdiv(T, tT))

    kernel = functools.partial(_learnable_sigmoid_kernel,
                               half_beta=0.5 * float(beta))

    out = pl.pallas_call(
        kernel,
        out_shape=jax.ShapeDtypeStruct((B, F, T), x.dtype),
        grid_spec=pl.GridSpec(
            grid=grid,
            in_specs=[
                pl.BlockSpec((tB, tF, tT), lambda b, f, t: (b, f, t)),
                # slope block index ignores b and t: the tiny block stays
                # resident across the batch and lane sweeps.
                pl.BlockSpec((tF, 1), lambda b, f, t: (f, 0)),
            ],
            out_specs=pl.BlockSpec((tB, tF, tT), lambda b, f, t: (b, f, t)),
        ),
        compiler_params=pltpu.CompilerParams(
            # No reduction anywhere: every axis is safely parallel (megacore
            # can shard any of them on v7x).
            dimension_semantics=("parallel", "parallel", "parallel"),
            vmem_limit_bytes=32 * 1024 * 1024,
        ),
    )(x3, slope)

    return out.reshape(orig_shape)


if __name__ == "__main__":
    key = jax.random.PRNGKey(0)
    k1, k2, k3 = jax.random.split(key, 3)

    # Typical usage: (batch, in_features, time)
    B, F, T = 2, 16, 256
    beta = 2.0

    x = jax.random.normal(k1, (B, F, T), dtype=jnp.float32)
    # Parameter init matches PyTorch __init__ (ones), perturbed so the per-row
    # broadcast path is actually exercised.
    slope = jnp.ones((F, 1), dtype=jnp.float32) \
        + 0.1 * jax.random.normal(k2, (F, 1), dtype=jnp.float32)

    out = jax.block_until_ready(learnable_sigmoid_2d(x, slope, beta=beta))
    ref = beta * jax.nn.sigmoid(slope[None, :, :] * x)
    assert out.shape == (B, F, T)
    assert jnp.allclose(out, ref, atol=1e-5, rtol=1e-5)

    # Ragged shapes (F not multiple of 8, T not multiple of 128): exercises the
    # cdiv / masked-last-block path with no wrapper-side pad or slice.
    Br, Fr, Tr = 3, 10, 200
    xr = jax.random.normal(k2, (Br, Fr, Tr), dtype=jnp.float32)
    sr = jnp.ones((Fr, 1), dtype=jnp.float32)
    outr = jax.block_until_ready(learnable_sigmoid_2d(xr, sr, beta=1.0))
    refr = jax.nn.sigmoid(sr[None, :, :] * xr)
    assert jnp.allclose(outr, refr, atol=1e-5, rtol=1e-5)

    # bf16 I/O smoke test (exercises dtype-aware sublane granularity).
    xb = jax.random.normal(k3, (B, F, T), dtype=jnp.bfloat16)
    outb = jax.block_until_ready(learnable_sigmoid_2d(xb, slope, beta=beta))
    refb = beta * jax.nn.sigmoid(slope[None, :, :] * xb.astype(jnp.float32))
    assert jnp.allclose(outb.astype(jnp.float32), refb, atol=2e-2, rtol=2e-2)

    print("KERNEL_OK")
</pallas_src>

<mosaic_0001>
module attributes {stable_mosaic.version = 11 : i64} {
  func.func @_learnable_sigmoid_kernel(%arg0: i32, %arg1: i32, %arg2: i32, %arg3: memref<2x16x256xf32, #tpu.memory_space<vmem>>, %arg4: memref<16x1xf32, #tpu.memory_space<vmem>>, %arg5: memref<2x16x256xf32, #tpu.memory_space<vmem>>) attributes {dimension_semantics = [#tpu.dimension_semantics<parallel>, #tpu.dimension_semantics<parallel>, #tpu.dimension_semantics<parallel>], iteration_bounds = array<i64: 1, 1, 1>, scalar_prefetch = 0 : i64, scratch_operands = 0 : i64, tpu.core_type = #tpu.core_type<tc>, window_params = [{transform_indices = @transform_0, window_bounds = array<i64: 2, 16, 256>}, {transform_indices = @transform_1, window_bounds = array<i64: 16, 1>}, {transform_indices = @transform_2, window_bounds = array<i64: 2, 16, 256>}]} {
    %c0 = arith.constant 0 : index
    %c0_0 = arith.constant 0 : index
    %c0_1 = arith.constant 0 : index
    %0 = vector.load %arg3[%c0, %c0_0, %c0_1] : memref<2x16x256xf32, #tpu.memory_space<vmem>>, vector<2x16x256xf32>
    %c0_2 = arith.constant 0 : index
    %c0_3 = arith.constant 0 : index
    %1 = vector.load %arg4[%c0_2, %c0_3] : memref<16x1xf32, #tpu.memory_space<vmem>>, vector<16x1xf32>
    %2 = vector.shape_cast %1 : vector<16x1xf32> to vector<1x16x1xf32>
    %3 = vector.broadcast %2 : vector<1x16x1xf32> to vector<2x16x256xf32>
    %4 = arith.mulf %3, %0 : vector<2x16x256xf32>
    %cst = arith.constant 5.000000e-01 : f32
    %5 = vector.broadcast %cst : f32 to vector<2x16x256xf32>
    %6 = arith.mulf %5, %4 : vector<2x16x256xf32>
    %7 = math.tanh %6 : vector<2x16x256xf32>
    %cst_4 = arith.constant 1.000000e+00 : f32
    %8 = vector.broadcast %cst_4 : f32 to vector<2x16x256xf32>
    %9 = arith.mulf %8, %7 : vector<2x16x256xf32>
    %cst_5 = arith.constant 1.000000e+00 : f32
    %10 = vector.broadcast %cst_5 : f32 to vector<2x16x256xf32>
    %11 = arith.addf %9, %10 : vector<2x16x256xf32>
    %c0_6 = arith.constant 0 : index
    %c0_7 = arith.constant 0 : index
    %c0_8 = arith.constant 0 : index
    %12 = vector.load %arg5[%c0_6, %c0_7, %c0_8] : memref<2x16x256xf32, #tpu.memory_space<vmem>>, vector<2x16x256xf32>
    tpu.vector_store %arg5[%c0_6, %c0_7, %c0_8], %11 {strides = array<i32>} : memref<2x16x256xf32, #tpu.memory_space<vmem>>, vector<2x16x256xf32>,
    return
  }
  func.func @transform_0(%arg0: i32, %arg1: i32, %arg2: i32) -> (i32, i32, i32) {
    %c0_i32 = arith.constant 0 : i32
    return %arg0, %arg1, %arg2 : i32, i32, i32
  }
  func.func @transform_1(%arg0: i32, %arg1: i32, %arg2: i32) -> (i32, i32) {
    %c0_i32 = arith.constant 0 : i32
    %c0_i32_0 = arith.constant 0 : i32
    return %arg1, %c0_i32 : i32, i32
  }
  func.func @transform_2(%arg0: i32, %arg1: i32, %arg2: i32) -> (i32, i32, i32) {
    %c0_i32 = arith.constant 0 : i32
    return %arg0, %arg1, %arg2 : i32, i32, i32
  }
}

</mosaic_0001>

<bundles_post_ra>
// kernel: tpu_custom_call.1
= control target key start
LH: loop header
LB: loop body
LE: loop exit
PB: predicated region body
PF: predicated region fallthrough
CT: control target
= control target key end

     0   :  { %7 = vsyncpa [#allocation3], 0  ;;  %s207_s0 = inlined_call_operand.hbm [shape: f32[2,16,256], index: 0, kind: input, shape index: {}]   ;;  %s208_s1 = inlined_call_operand.vmem [shape: f32[16,1], index: 1, kind: input, shape index: {}]   ;;  %s209_s2 = inlined_call_operand.hbm [shape: f32[2,16,256], index: 2, kind: output, shape index: {}]  }
   0x1   :  { %8 = vsyncpa [#allocation4], 0  ;;  %s169_s9 = smov [#allocation2]  }
   0x2   :  { %s14_s10 = sshll.u32 %s169_s9, 4  ;;  %s15_s10 = int_to_ptr.vmem [resolvable:$true] %s14_s10 }
   0x3   :  { %s133_s11 = scalar_lea.vmem %s15_s10, 1024  ;;  %p138_p1 = scmp.lt.s32.totalorder %s15_s10, %s15_s10 }
   0x4   :  { %p134_p0 = scmp.ne.s32.totalorder %s15_s10, %s133_s11  ;;  %p139_p2 = scmp.lt.s32.totalorder %s133_s11, %s133_s11 }
   0x6   :  { %p140_p3 = por %p139_p2, %p138_p1 }
   0x8   :  { %p141_p4 = pnand %p140_p3, %p134_p0 }
   0xa   :  { %144 = shalt.err (!%p141_p4)
}
   0xb   :  { %s170_s12 = smov 256   ;;  %s171_s13 = smov 16  }
   0xc   :  { %20 = dma.hbm_to_vmem [thread:$0]  %s207_s0, 1024, %s15_s10, [#allocation3], %s170_s12, %s170_s12, %s171_s13  }
   0xd   :  { %165 = dma.done.wait [#allocation3], 1024  }
   0xe   :  { %166 = vsyncadd [#allocation3], 4294966272  ;;  %v172_v0 = vmov 0   ;;  %v34_v1 = vld [vmem:[%s208_s1] sm:$0xff]  ;;  %v35_v2 = vld [vmem:[%s208_s1 + $0x8] sm:$0xff]  ;;  %s173_s0 = smov [#allocation5]  }
   0xf   :  { %108 = vset.pattern.permute.xlu0 %v172_v0  ;;  %v26_v3 = vld [vmem:[#allocation2] sm:$0xff]  ;;  %v27_v4 = vld [vmem:[#allocation2 + $0x8] sm:$0xff]  ;;  %v28_v12 = vld [vmem:[#allocation2 + $0x10] sm:$0xff]  ;;  %s91_s1 = sshll.u32 %s173_s0, 4  ;;  %s92_s1 = int_to_ptr.vmem [resolvable:$true] %s91_s1 }
  0x10   :  { %38 = vperm.xlu0 %108, %v34_v1   ;;  %v30_v5 = vld [vmem:[#allocation2 + $0x20] sm:$0xff]  ;;  %v31_v6 = vld [vmem:[#allocation2 + $0x28] sm:$0xff]  ;;  %v29_v13 = vld [vmem:[#allocation2 + $0x18] sm:$0xff]  ;;  %s145_s20 = scalar_lea.vmem %s92_s1, 1024  ;;  %p150_p6 = scmp.lt.s32.totalorder %s92_s1, %s92_s1 }
  0x11   :  { %v32_v14 = vld [vmem:[#allocation2 + $0x30] sm:$0xff]  ;;  %v33_v18 = vld [vmem:[#allocation2 + $0x38] sm:$0xff]  ;;  %p146_p5 = scmp.ne.s32.totalorder %s92_s1, %s145_s20  ;;  %p151_p7 = scmp.lt.s32.totalorder %s145_s20, %s145_s20 }
  0x13   :  { %p152_p8 = por %p151_p7, %p150_p6 }
  0x14   :  { %43 = vperm.xlu0 %108, %v35_v2  }
  0x15   :  { %p153_p9 = pnand %p152_p8, %p146_p5 }
  0x8b   :  { %v39_v7 = vpop.permute.xlu0 %38 }
  0x8c   :  { %v46_v8 = vmul.f32 %v39_v7, %v26_v3  ;;  %v47_v9 = vmul.f32 %v39_v7, %v27_v4  ;;  %v50_v10 = vmul.f32 %v39_v7, %v30_v5  ;;  %v51_v11 = vmul.f32 %v39_v7, %v31_v6 }
  0x8e   :  { %v54_v15 = vmul.f32 0.5, %v46_v8  ;;  %v55_v16 = vmul.f32 0.5, %v47_v9  ;;  %v58_v17 = vmul.f32 0.5, %v50_v10  ;;  %v59_v19 = vmul.f32 0.5, %v51_v11 }
  0x8f   :  { %v44_v20 = vpop.permute.xlu0 %43 }
  0x90   :  { %109 = vtanh.f32 %v54_v15  ;;  %v48_v21 = vmul.f32 %v44_v20, %v28_v12  ;;  %v49_v22 = vmul.f32 %v44_v20, %v29_v13  ;;  %v52_v23 = vmul.f32 %v44_v20, %v32_v14 }
  0x91   :  { %111 = vtanh.f32 %v55_v16  ;;  %v53_v24 = vmul.f32 %v44_v20, %v33_v18 }
  0x92   :  { %113 = vtanh.f32 %v58_v17  ;;  %v56_v25 = vmul.f32 0.5, %v48_v21  ;;  %v57_v26 = vmul.f32 0.5, %v49_v22  ;;  %v60_v27 = vmul.f32 0.5, %v52_v23 }
  0x93   :  { %115 = vtanh.f32 %v59_v19  ;;  %v61_v28 = vmul.f32 0.5, %v53_v24 }
  0x94   :  { %117 = vtanh.f32 %v56_v25 }
  0x95   :  { %119 = vtanh.f32 %v57_v26 }
  0x96   :  { %121 = vtanh.f32 %v60_v27 }
  0x97   :  { %123 = vtanh.f32 %v61_v28 }
  0x9d   :  { %v110_v29 = vpop.eup %109 }
  0x9e   :  { %v112_v30 = vpop.eup %111  ;;  %v70_v31 = vadd.f32 1.0, %v110_v29 }
  0x9f   :  { %v114_v32 = vpop.eup %113  ;;  %v71_v33 = vadd.f32 1.0, %v112_v30 }
  0xa0   :  { %v116_v34 = vpop.eup %115  ;;  %v74_v35 = vadd.f32 1.0, %v114_v32  ;;  %78 = vst [vmem:[#allocation5] sm:$0xff] %v70_v31 }
  0xa1   :  { %v118_v36 = vpop.eup %117  ;;  %v75_v37 = vadd.f32 1.0, %v116_v34  ;;  %79 = vst [vmem:[#allocation5 + $0x8] sm:$0xff] %v71_v33 }
  0xa2   :  { %v120_v38 = vpop.eup %119  ;;  %82 = vst [vmem:[#allocation5 + $0x20] sm:$0xff] %v74_v35  ;;  %v72_v39 = vadd.f32 1.0, %v118_v36 }
  0xa3   :  { %v122_v40 = vpop.eup %121  ;;  %83 = vst [vmem:[#allocation5 + $0x28] sm:$0xff] %v75_v37  ;;  %v73_v41 = vadd.f32 1.0, %v120_v38 }
  0xa4   :  { %v124_v42 = vpop.eup %123  ;;  %v76_v43 = vadd.f32 1.0, %v122_v40  ;;  %80 = vst [vmem:[#allocation5 + $0x10] sm:$0xff] %v72_v39 }
  0xa5   :  { %v77_v44 = vadd.f32 1.0, %v124_v42  ;;  %81 = vst [vmem:[#allocation5 + $0x18] sm:$0xff] %v73_v41 }
  0xa6   :  { %84 = vst [vmem:[#allocation5 + $0x30] sm:$0xff] %v76_v43 }
  0xa7   :  { %85 = vst [vmem:[#allocation5 + $0x38] sm:$0xff] %v77_v44 }
  0xa8   :  { %156 = shalt.err (!%p153_p9)
}
  0xa9   :  { %97 = dma.vmem_to_hbm [thread:$0]  %s92_s1, 1024, %s209_s2, [#allocation4], %s170_s12, %s170_s12, %s171_s13  }
  0xaa   :  { %167 = dma.done.wait [#allocation4], 1024  }
  0xab   :  { %168 = vsyncadd [#allocation4], 4294966272 }
  0xac   :  { %101 = vsyncpa [#allocation3], 1 }
  0xad   :  { %102 = vsyncpa [#allocation4], 1 }

</bundles_post_ra>
